<compile_context>
chip_gen: v7x
topology: tpu7x:2x2x1
jax: 0.10.0
libtpu: 0.0.40
codegen_flags: <defaults>
</compile_context>

<pallas_src>
import functools

import jax
import jax.numpy as jnp
from jax import lax
from jax.experimental import pallas as pl
from jax.experimental.pallas import tpu as pltpu


def _round_up(x, m):
    return ((x + m - 1) // m) * m


def _loss_kernel(logits_ref, w_ref, tgt_ref, out_ref, *, n_true, c_true, tile_n):
    # logits_ref: (TILE_N, C_pad)  input dtype (f32 or bf16) in VMEM
    # w_ref:      (1, C_pad)       f32 in VMEM (class weights)
    # tgt_ref:    (TILE_N, 1)      i32 in VMEM (target class per row)
    # out_ref:    (1, 8, 128)      f32 in VMEM (lane-dense per-tile partial sum)
    c_pad = logits_ref.shape[1]

    # Upcast on load: keeps HBM traffic at the input width, arithmetic in f32
    # (v5e has no bf16 VALU).
    adj = logits_ref[...].astype(jnp.float32) * w_ref[...]          # (TILE_N, C_pad)

    col = lax.broadcasted_iota(jnp.int32, adj.shape, 1)              # class index / lane
    if c_pad != c_true:
        # Padded classes must not contribute to max / log-sum-exp.
        adj = jnp.where(col < c_true, adj, -jnp.inf)

    # Numerically stable log-sum-exp over classes.
    m = jnp.max(adj, axis=-1, keepdims=True)                         # (TILE_N, 1)
    lse = m + jnp.log(jnp.sum(jnp.exp(adj - m), axis=-1, keepdims=True))

    # Target-class logit via masked select (avoids -inf * 0 NaNs on padded lanes).
    tgt_logit = jnp.sum(jnp.where(col == tgt_ref[...], adj, 0.0),
                        axis=-1, keepdims=True)                      # (TILE_N, 1)

    per_row = lse - tgt_logit                                        # -log p(target)

    # Mask padded rows of a ragged last batch tile out of the sum.
    if True:  # cheap; also correct when the batch divides evenly
        row = (pl.program_id(0) * tile_n
               + lax.broadcasted_iota(jnp.int32, per_row.shape, 0))
        per_row = jnp.where(row < n_true, per_row, 0.0)

    partial = jnp.sum(per_row, axis=0, keepdims=True)                # (1, 1)
    out_ref[...] = jnp.broadcast_to(partial[None], out_ref.shape)    # lane-dense store


def logit_adjustment_loss(logits, class_weights, targets):
    """logits: [N, C] float (f32/bf16), class_weights: [C] float, targets: [N] int."""
    n, c = logits.shape
    c_pad = max(128, _round_up(c, 128))
    in_itemsize = jnp.dtype(logits.dtype).itemsize

    # Tile the batch so that double-buffered input blocks + the f32 working set stay
    # comfortably inside the smallest scoped-VMEM default across generations.
    per_row_bytes = 2 * c_pad * in_itemsize + 2 * c_pad * 4
    tile_n = (16 * 1024 * 1024) // per_row_bytes
    tile_n = max(8, min(512, (tile_n // 8) * 8))
    tile_n = min(tile_n, _round_up(n, 8))          # don't over-pad tiny batches

    n_pad = _round_up(n, tile_n)
    num_tiles = n_pad // tile_n

    # Pad class dim to a lane multiple and batch dim to the tile size (no-ops when
    # already aligned). Logits are NOT upcast here — they cross HBM in their dtype.
    if c_pad != c or n_pad != n:
        logits = jnp.pad(logits, ((0, n_pad - n), (0, c_pad - c)))
    w2d = jnp.pad(class_weights.astype(jnp.float32), (0, c_pad - c)).reshape(1, c_pad)
    tgt2d = jnp.pad(targets.astype(jnp.int32), (0, n_pad - n)).reshape(n_pad, 1)

    kernel = functools.partial(_loss_kernel, n_true=n, c_true=c, tile_n=tile_n)

    partials = pl.pallas_call(
        kernel,
        out_shape=jax.ShapeDtypeStruct((num_tiles, 8, 128), jnp.float32),
        grid_spec=pltpu.PrefetchScalarGridSpec(
            num_scalar_prefetch=0,
            grid=(num_tiles,),
            in_specs=[
                pl.BlockSpec((tile_n, c_pad), lambda i: (i, 0)),   # logits tile
                pl.BlockSpec((1, c_pad), lambda i: (0, 0)),        # class weights (resident)
                pl.BlockSpec((tile_n, 1), lambda i: (i, 0)),       # targets tile
            ],
            out_specs=pl.BlockSpec((1, 8, 128), lambda i: (i, 0, 0)),
        ),
        compiler_params=pltpu.CompilerParams(
            dimension_semantics=("parallel",),
        ),
    )(logits, w2d, tgt2d)

    # Tiny wrapper-side reduction of the per-tile partial sums, then the mean.
    return jnp.sum(partials[:, 0, 0]) * (1.0 / n)


def _reference_loss(logits, class_weights, targets):
    adj = logits * class_weights[None, :]
    logp = jax.nn.log_softmax(adj, axis=-1)
    nll = -jnp.take_along_axis(logp, targets[:, None], axis=-1)[:, 0]
    return jnp.mean(nll)


if __name__ == "__main__":
    key = jax.random.PRNGKey(0)
    k_logits, k_weights, k_targets, k2_logits, k2_weights, k2_targets = (
        jax.random.split(key, 6))

    # Case 1: small f32 shapes consistent with the module (batch=8, classes=32).
    N, C = 8, 32
    logits = jax.random.normal(k_logits, (N, C), dtype=jnp.float32)
    class_weights = 1.0 + 0.1 * jax.random.normal(k_weights, (C,), dtype=jnp.float32)
    targets = jax.random.randint(k_targets, (N,), 0, C, dtype=jnp.int32)

    loss = logit_adjustment_loss(logits, class_weights, targets)
    jax.block_until_ready(loss)
    ref = _reference_loss(logits, class_weights, targets)
    assert jnp.allclose(loss, ref, atol=1e-5, rtol=1e-5), (loss, ref)

    # Case 2: bf16 logits, ragged batch and non-lane-aligned class count
    # (exercises class padding, row masking and the in-kernel upcast).
    N2, C2 = 37, 200
    logits2 = jax.random.normal(k2_logits, (N2, C2), dtype=jnp.float32).astype(jnp.bfloat16)
    class_weights2 = 1.0 + 0.1 * jax.random.normal(k2_weights, (C2,), dtype=jnp.float32)
    targets2 = jax.random.randint(k2_targets, (N2,), 0, C2, dtype=jnp.int32)

    loss2 = logit_adjustment_loss(logits2, class_weights2, targets2)
    jax.block_until_ready(loss2)
    ref2 = _reference_loss(logits2.astype(jnp.float32), class_weights2, targets2)
    assert jnp.allclose(loss2, ref2, atol=1e-4, rtol=1e-4), (loss2, ref2)

    print("KERNEL_OK")
</pallas_src>

<mosaic_0001>
module attributes {stable_mosaic.version = 11 : i64} {
  func.func @_loss_kernel(%arg0: i32, %arg1: memref<8x128xf32, #tpu.memory_space<vmem>>, %arg2: memref<1x128xf32, #tpu.memory_space<vmem>>, %arg3: memref<8x1xi32, #tpu.memory_space<vmem>>, %arg4: memref<1x8x128xf32, #tpu.memory_space<vmem>>) attributes {dimension_semantics = [#tpu.dimension_semantics<parallel>], iteration_bounds = array<i64: 1>, scalar_prefetch = 0 : i64, scratch_operands = 0 : i64, tpu.core_type = #tpu.core_type<tc>, window_params = [{transform_indices = @transform_0, window_bounds = array<i64: 8, 128>}, {pipeline_mode = #tpu.pipeline_mode<synchronous>, transform_indices = @transform_1, window_bounds = array<i64: 1, 128>}, {transform_indices = @transform_2, window_bounds = array<i64: 8, 1>}, {transform_indices = @transform_3, window_bounds = array<i64: 1, 8, 128>}]} {
    %c0 = arith.constant 0 : index
    %c0_0 = arith.constant 0 : index
    %0 = vector.load %arg1[%c0, %c0_0] : memref<8x128xf32, #tpu.memory_space<vmem>>, vector<8x128xf32>
    %c0_1 = arith.constant 0 : index
    %c0_2 = arith.constant 0 : index
    %1 = vector.load %arg2[%c0_1, %c0_2] : memref<1x128xf32, #tpu.memory_space<vmem>>, vector<1x128xf32>
    %2 = vector.broadcast %1 : vector<1x128xf32> to vector<8x128xf32>
    %3 = arith.mulf %0, %2 : vector<8x128xf32>
    %4 = tpu.iota {dimensions = array<i32: 1>} : vector<8x128xi32>
    %c32_i32 = arith.constant 32 : i32
    %5 = vector.broadcast %c32_i32 : i32 to vector<8x128xi32>
    %6 = arith.cmpi slt, %4, %5 : vector<8x128xi32>
    %cst = arith.constant 0xFF800000 : f32
    %7 = vector.broadcast %cst : f32 to vector<8x128xf32>
    %8 = arith.select %6, %3, %7 : vector<8x128xi1>, vector<8x128xf32>
    %cst_3 = arith.constant dense<0xFF800000> : vector<8xf32>
    %9 = vector.multi_reduction <maximumf>, %8, %cst_3 [1] : vector<8x128xf32> to vector<8xf32>
    %10 = vector.shape_cast %9 : vector<8xf32> to vector<8x1xf32>
    %11 = vector.broadcast %10 : vector<8x1xf32> to vector<8x128xf32>
    %12 = arith.subf %8, %11 : vector<8x128xf32>
    %13 = math.exp %12 : vector<8x128xf32>
    %cst_4 = arith.constant dense<0.000000e+00> : vector<8xf32>
    %14 = vector.multi_reduction <add>, %13, %cst_4 [1] : vector<8x128xf32> to vector<8xf32>
    %15 = vector.shape_cast %14 : vector<8xf32> to vector<8x1xf32>
    %16 = math.log %15 : vector<8x1xf32>
    %17 = arith.addf %10, %16 : vector<8x1xf32>
    %c0_5 = arith.constant 0 : index
    %c0_6 = arith.constant 0 : index
    %18 = vector.load %arg3[%c0_5, %c0_6] : memref<8x1xi32, #tpu.memory_space<vmem>>, vector<8x1xi32>
    %19 = vector.broadcast %18 : vector<8x1xi32> to vector<8x128xi32>
    %20 = arith.cmpi eq, %4, %19 : vector<8x128xi32>
    %cst_7 = arith.constant 0.000000e+00 : f32
    %21 = vector.broadcast %cst_7 : f32 to vector<8x128xf32>
    %22 = arith.select %20, %8, %21 : vector<8x128xi1>, vector<8x128xf32>
    %cst_8 = arith.constant dense<0.000000e+00> : vector<8xf32>
    %23 = vector.multi_reduction <add>, %22, %cst_8 [1] : vector<8x128xf32> to vector<8xf32>
    %24 = vector.shape_cast %23 : vector<8xf32> to vector<8x1xf32>
    %25 = arith.subf %17, %24 : vector<8x1xf32>
    %c8_i32 = arith.constant 8 : i32
    %26 = arith.muli %arg0, %c8_i32 : i32
    %27 = tpu.iota {dimensions = array<i32: 0>} : vector<8x1xi32>
    %28 = vector.broadcast %26 : i32 to vector<8x1xi32>
    %29 = arith.addi %28, %27 : vector<8x1xi32>
    %c8_i32_9 = arith.constant 8 : i32
    %30 = vector.broadcast %c8_i32_9 : i32 to vector<8x1xi32>
    %31 = arith.cmpi slt, %29, %30 : vector<8x1xi32>
    %cst_10 = arith.constant 0.000000e+00 : f32
    %32 = vector.broadcast %cst_10 : f32 to vector<8x1xf32>
    %33 = arith.select %31, %25, %32 : vector<8x1xi1>, vector<8x1xf32>
    %cst_11 = arith.constant dense<0.000000e+00> : vector<1xf32>
    %34 = vector.multi_reduction <add>, %33, %cst_11 [0] : vector<8x1xf32> to vector<1xf32>
    %35 = vector.shape_cast %34 : vector<1xf32> to vector<1x1xf32>
    %36 = vector.shape_cast %35 : vector<1x1xf32> to vector<1x1x1xf32>
    %37 = vector.shape_cast %36 : vector<1x1x1xf32> to vector<1x1x1xf32>
    %38 = vector.broadcast %37 : vector<1x1x1xf32> to vector<1x8x128xf32>
    %c0_12 = arith.constant 0 : index
    %c0_13 = arith.constant 0 : index
    %c0_14 = arith.constant 0 : index
    %39 = vector.load %arg4[%c0_12, %c0_13, %c0_14] : memref<1x8x128xf32, #tpu.memory_space<vmem>>, vector<1x8x128xf32>
    tpu.vector_store %arg4[%c0_12, %c0_13, %c0_14], %38 {strides = array<i32>} : memref<1x8x128xf32, #tpu.memory_space<vmem>>, vector<1x8x128xf32>,
    return
  }
  func.func @transform_0(%arg0: i32) -> (i32, i32) {
    %c0_i32 = arith.constant 0 : i32
    %c0_i32_0 = arith.constant 0 : i32
    return %arg0, %c0_i32 : i32, i32
  }
  func.func @transform_1(%arg0: i32) -> (i32, i32) {
    %c0_i32 = arith.constant 0 : i32
    %c0_i32_0 = arith.constant 0 : i32
    %c0_i32_1 = arith.constant 0 : i32
    return %c0_i32, %c0_i32_0 : i32, i32
  }
  func.func @transform_2(%arg0: i32) -> (i32, i32) {
    %c0_i32 = arith.constant 0 : i32
    %c0_i32_0 = arith.constant 0 : i32
    return %arg0, %c0_i32 : i32, i32
  }
  func.func @transform_3(%arg0: i32) -> (i32, i32, i32) {
    %c0_i32 = arith.constant 0 : i32
    %c0_i32_0 = arith.constant 0 : i32
    %c0_i32_1 = arith.constant 0 : i32
    return %arg0, %c0_i32, %c0_i32_0 : i32, i32, i32
  }
}

</mosaic_0001>

<bundles_post_ra>
// kernel: tpu_custom_call.1
= control target key start
LH: loop header
LB: loop body
LE: loop exit
PB: predicated region body
PF: predicated region fallthrough
CT: control target
= control target key end

     0   :  { %v24_v2 = vlaneseq  ;;  %v107_v4 = vmov 0   ;;  %s150_s0 = inlined_call_operand.vmem [shape: f32[8,128], index: 0, kind: input, shape index: {}]   ;;  %s151_s1 = inlined_call_operand.vmem [shape: f32[1,128], index: 1, kind: input, shape index: {}]   ;;  %s152_s2 = inlined_call_operand.vmem [shape: s32[8,1], index: 2, kind: input, shape index: {}]   ;;  %s153_s3 = inlined_call_operand.hbm [shape: f32[1,8,128], index: 3, kind: output, shape index: {}]  }
   0x1   :  { %v15_v0 = vld [vmem:[%s150_s0] sm:$0xff]  ;;  %78 = vset.pattern.permute.xlu0 %v107_v4 }
   0x2   :  { %v75_v1 = vld [vmem:[%s151_s1] ss:$0 sm:$0xff] }
   0x3   :  { %v23_v3 = vmul.f32 %v75_v1, %v15_v0 }
   0x4   :  { %8 = vsyncpa [#allocation3], 0  ;;  %v25_v5 = vand.u32 127, %v24_v2  ;;  %v38_v7 = vld [vmem:[%s152_s2] sm:$0xff]  ;;  %s108_s0 = smov [#allocation2]  }
   0x5   :  { %s67_s1 = sshll.u32 %s108_s0, 4  ;;  %s68_s1 = int_to_ptr.vmem [resolvable:$true] %s67_s1 }
   0x6   :  { %vm26_vm0 = vcmp.lt.s32.totalorder %v25_v5, 32  ;;  %s83_s2 = scalar_lea.vmem %s68_s1, 128  ;;  %p88_p1 = scmp.lt.s32.totalorder %s68_s1, %s68_s1 }
   0x7   :  { %v27_v6 = vsel %vm26_vm0, %v23_v3, -inf  ;;  %p84_p0 = scmp.ne.s32.totalorder %s68_s1, %s83_s2  ;;  %p89_p2 = scmp.lt.s32.totalorder %s83_s2, %s83_s2 }
   0x8   :  { %28 = vmax.xlane.f32.xlu0 %v27_v6 }
   0x9   :  { %p90_p3 = por %p89_p2, %p88_p1 }
   0xb   :  { %p91_p4 = pnand %p90_p3, %p84_p0 }
  0x1e   :  { %40 = vperm.xlu0 %78, %v38_v7  }
  0x95   :  { %v29_v8 = vpop.xlane.xlu0 %28 }
  0x96   :  { %v30_v9 = vsub.f32 %v27_v6, %v29_v8 }
  0x98   :  { %v31_v10 = vmul.f32 1.442695, %v30_v9 }
  0x9a   :  { %79 = vpow2.f32 %v31_v10 }
  0x9d   :  { %v41_v11 = vpop.permute.xlu0 %40 }
  0x9e   :  { %vm42_vm1 = vcmp.eq.s32.totalorder %v25_v5, %v41_v11 }
  0x9f   :  { %v43_v13 = vsel %vm42_vm1, %v27_v6, 0.0 }
  0xa4   :  { %v80_v12 = vpop.eup %79 }
  0xa5   :  { %33 = vadd.xlane.f32.xlu1 %v80_v12 }
  0xa9   :  { %44 = vadd.xlane.f32.xlu1 %v43_v13 }
 0x132   :  { %v34_v14 = vpop.xlane.xlu1 %33 }
 0x133   :  { %81 = vlog2.f32 %v34_v14 }
 0x136   :  { %v45_v17 = vpop.xlane.xlu1 %44 }
 0x13d   :  { %v82_v15 = vpop.eup %81 }
 0x13e   :  { %v36_v16 = vmul.f32 0.6931472, %v82_v15 }
 0x140   :  { %v37_v18 = vadd.f32 %v36_v16, %v29_v8 }
 0x142   :  { %v46_v19 = vsub.f32 %v37_v18, %v45_v17 }
 0x144   :  { %v54_v20 = vrot.slane %v46_v19, 4 }
 0x146   :  { %v55_v21 = vadd.f32 %v54_v20, %v46_v19 }
 0x148   :  { %v56_v22 = vrot.slane %v55_v21, 2 }
 0x14a   :  { %v57_v23 = vadd.f32 %v56_v22, %v55_v21 }
 0x14c   :  { %v58_v24 = vrot.slane %v57_v23, 1 }
 0x14e   :  { %v59_v25 = vadd.f32 %v58_v24, %v57_v23 }
 0x150   :  { %60 = vst [vmem:[#allocation2] sm:$0xff] %v59_v25 }
 0x151   :  { %94 = shalt.err (!%p91_p4)
}
 0x152   :  { %s95_s20 = scalar_lea.hbm %s153_s3, 128 }
 0x153   :  { %p96_p5 = scmp.ne.s32.totalorder %s153_s3, %s95_s20  ;;  %p99_p6 = scmp.lt.u32.totalorder %s95_s20, %s153_s3 }
 0x155   :  { %p101_p7 = pnand %p99_p6, %p96_p5 }
 0x157   :  { %104 = shalt.err (!%p101_p7)
}
 0x158   :  { %70 = dma.vmem_to_hbm [thread:$0]  %s68_s1, 128, %s153_s3, [#allocation3]  }
 0x159   :  { %105 = dma.done.wait [#allocation3], 128  }
 0x15a   :  { %106 = vsyncadd [#allocation3], 4294967168 }
 0x15b   :  { %74 = vsyncpa [#allocation3], 1 }

</bundles_post_ra>
